<compile_context>
chip_gen: v7x
topology: tpu7x:2x2x1
jax: 0.10.0
libtpu: 0.0.40
codegen_flags: <defaults>
</compile_context>

<pallas_src>
import functools

import jax
import jax.numpy as jnp
from jax.experimental import pallas as pl
from jax.experimental.pallas import tpu as pltpu

LANE = 128
NEG_SLOPE = 0.01  # torch.nn.LeakyReLU() default


def _round_up(n, m):
    return ((n + m - 1) // m) * m


def _use_bf16_epilogue():
    """bf16 elementwise only where the VPU has packed bf16 (v6e/v7x)."""
    try:
        kind = jax.devices()[0].device_kind.lower()
    except Exception:
        return True
    for old in ("v2", "v3", "v4", "v5"):
        if old in kind:
            return False
    return True


def mlp_kernel(x_ref, w1_ref, b1_ref, w2_ref, b2_ref, w3_ref, b3_ref,
               w4_ref, b4_ref, o_ref, *, bf16_epilogue):
    x = x_ref[...]  # already bf16 (cast fused into the wrapper-side pad)

    def layer(h_in, w_ref, b_ref):
        acc = jnp.dot(h_in, w_ref[...], preferred_element_type=jnp.float32)
        if bf16_epilogue:
            # Packed-bf16 VALU path: half the elementwise work & vreg footprint.
            h = acc.astype(jnp.bfloat16) + b_ref[...].astype(jnp.bfloat16)
            return jnp.maximum(h, NEG_SLOPE * h)
        h = acc + b_ref[...]
        return jnp.maximum(h, NEG_SLOPE * h).astype(jnp.bfloat16)

    h = layer(x, w1_ref, b1_ref)
    h = layer(h, w2_ref, b2_ref)
    h = layer(h, w3_ref, b3_ref)

    z = jnp.dot(h, w4_ref[...], preferred_element_type=jnp.float32) + b4_ref[...]
    # sigmoid(z) = 0.5 * (tanh(z/2) + 1): one EUP op, strictly in (0, 1) range
    # behavior matches jax.nn.sigmoid without the approx-reciprocal overshoot.
    o_ref[...] = (0.5 * (jnp.tanh(0.5 * z) + 1.0)).astype(o_ref.dtype)


def init_params(key, input_len):
    """Deterministic synthetic init (shapes/init rule match nn.Linear)."""
    dims = [input_len, 1000, 250, 100, 1]
    params = {}
    keys = jax.random.split(key, 2 * (len(dims) - 1))
    for li in range(len(dims) - 1):
        fan_in, fan_out = dims[li], dims[li + 1]
        bound = 1.0 / jnp.sqrt(jnp.float32(fan_in))
        params[f"w{li + 1}"] = jax.random.uniform(
            keys[2 * li], (fan_in, fan_out), minval=-bound, maxval=bound,
            dtype=jnp.float32)
        params[f"b{li + 1}"] = jax.random.uniform(
            keys[2 * li + 1], (1, fan_out), minval=-bound, maxval=bound,
            dtype=jnp.float32)
    return params


def prepare_params(params, input_len):
    """Pad all dims to TPU-friendly sizes once, cast weights to bf16.

    Padded weight rows/cols and bias cols are zero, so results on the real
    (unpadded) output columns are unchanged (leaky_relu(0) == 0).
    """
    dims = [input_len, 1000, 250, 100, 1]
    pad_dims = [_round_up(input_len, 16), 1024, 256, 128, LANE]
    prepped = {}
    for li in range(4):
        w, b = params[f"w{li + 1}"], params[f"b{li + 1}"]
        in_d, out_d = dims[li], dims[li + 1]
        in_p, out_p = pad_dims[li], pad_dims[li + 1]
        w_p = jnp.zeros((in_p, out_p), jnp.float32).at[:in_d, :out_d].set(w)
        b_p = jnp.zeros((1, out_p), jnp.float32).at[:, :out_d].set(b)
        prepped[f"w{li + 1}"] = w_p.astype(jnp.bfloat16)  # half the weight DMA
        prepped[f"b{li + 1}"] = b_p                        # biases stay f32
    return prepped


@functools.partial(jax.jit, static_argnames=("block_m_max",))
def baseline_model_forward(x, prepped, block_m_max=512):
    """Pallas implementation of BaselineModel.forward.

    x: (B, input_len) float32
    prepped: output of prepare_params (lane-padded, bf16 weights / f32 biases)
    returns: (B, 1) float32 in (0, 1)
    """
    B, d_in = x.shape
    w1, b1 = prepped["w1"], prepped["b1"]
    w2, b2 = prepped["w2"], prepped["b2"]
    w3, b3 = prepped["w3"], prepped["b3"]
    w4, b4 = prepped["w4"], prepped["b4"]
    d_in_pad = w1.shape[0]

    # --- grid shaping (all static, derived from shapes) ---
    B_eff = max(B, 1)
    block_m = min(block_m_max, _round_up(B_eff, 16))   # no giant pad for tiny B
    n_steps = -(-B_eff // block_m)
    if n_steps == 1 and B_eff > 256:
        # Give v7x's 2nd TensorCore work: aim for >= 2 grid steps on the
        # "parallel" batch axis when the batch is large enough to split.
        block_m = _round_up(-(-B_eff // 2), 16)
        n_steps = -(-B_eff // block_m)
    b_pad = n_steps * block_m

    # --- bf16 cast fused with the zero-pad; skip the copy when unneeded ---
    x_bf = x.astype(jnp.bfloat16)
    if b_pad != B or d_in_pad != d_in:
        x_p = jnp.zeros((b_pad, d_in_pad), jnp.bfloat16).at[:B, :d_in].set(x_bf)
    else:
        x_p = x_bf

    kernel = functools.partial(mlp_kernel, bf16_epilogue=_use_bf16_epilogue())
    full = lambda arr: pl.BlockSpec(arr.shape, lambda i: (0, 0))

    out_padded = pl.pallas_call(
        kernel,
        out_shape=jax.ShapeDtypeStruct((b_pad, LANE), jnp.float32),
        grid_spec=pltpu.PrefetchScalarGridSpec(
            num_scalar_prefetch=0,
            grid=(n_steps,),
            in_specs=[
                pl.BlockSpec((block_m, d_in_pad), lambda i: (i, 0)),  # x tile
                full(w1), full(b1),
                full(w2), full(b2),
                full(w3), full(b3),
                full(w4), full(b4),
            ],
            # Lane-dense output tile (last dim = 128); real column is col 0.
            out_specs=pl.BlockSpec((block_m, LANE), lambda i: (i, 0)),
        ),
        compiler_params=pltpu.CompilerParams(
            dimension_semantics=("parallel",),
        ),
    )(x_p, w1, b1, w2, b2, w3, b3, w4, b4)

    return out_padded[:B, :1]


def reference_forward(x, params):
    h = x
    for li in range(1, 4):
        h = h @ params[f"w{li}"] + params[f"b{li}"]
        h = jnp.maximum(h, NEG_SLOPE * h)
    h = h @ params["w4"] + params["b4"]
    return jax.nn.sigmoid(h)


if __name__ == "__main__":
    key = jax.random.PRNGKey(0)
    k_param, k_x = jax.random.split(key)

    input_len = 32
    batch = 8

    params = init_params(k_param, input_len)
    prepped = prepare_params(params, input_len)
    x = jax.random.normal(k_x, (batch, input_len), dtype=jnp.float32)

    out = baseline_model_forward(x, prepped)
    out = jax.block_until_ready(out)

    ref = reference_forward(x, params)
    assert out.shape == (batch, 1), out.shape
    assert bool(jnp.all((out > 0.0) & (out < 1.0)))
    max_err = float(jnp.max(jnp.abs(out - ref)))
    # bf16 matmul inputs / bf16 epilogues (f32 MXU acc) vs. full-f32 reference.
    assert max_err < 2e-2, f"max abs err {max_err}"

    print("KERNEL_OK")
</pallas_src>

<mosaic_0001>
module attributes {stable_mosaic.version = 11 : i64} {
  func.func @mlp_kernel(%arg0: i32, %arg1: memref<16x32xbf16, #tpu.memory_space<vmem>>, %arg2: memref<32x1024xbf16, #tpu.memory_space<vmem>>, %arg3: memref<1x1024xf32, #tpu.memory_space<vmem>>, %arg4: memref<1024x256xbf16, #tpu.memory_space<vmem>>, %arg5: memref<1x256xf32, #tpu.memory_space<vmem>>, %arg6: memref<256x128xbf16, #tpu.memory_space<vmem>>, %arg7: memref<1x128xf32, #tpu.memory_space<vmem>>, %arg8: memref<128x128xbf16, #tpu.memory_space<vmem>>, %arg9: memref<1x128xf32, #tpu.memory_space<vmem>>, %arg10: memref<16x128xf32, #tpu.memory_space<vmem>>) attributes {dimension_semantics = [#tpu.dimension_semantics<parallel>], iteration_bounds = array<i64: 1>, scalar_prefetch = 0 : i64, scratch_operands = 0 : i64, tpu.core_type = #tpu.core_type<tc>, window_params = [{transform_indices = @transform_0, window_bounds = array<i64: 16, 32>}, {pipeline_mode = #tpu.pipeline_mode<synchronous>, transform_indices = @transform_1, window_bounds = array<i64: 32, 1024>}, {pipeline_mode = #tpu.pipeline_mode<synchronous>, transform_indices = @transform_2, window_bounds = array<i64: 1, 1024>}, {pipeline_mode = #tpu.pipeline_mode<synchronous>, transform_indices = @transform_3, window_bounds = array<i64: 1024, 256>}, {pipeline_mode = #tpu.pipeline_mode<synchronous>, transform_indices = @transform_4, window_bounds = array<i64: 1, 256>}, {pipeline_mode = #tpu.pipeline_mode<synchronous>, transform_indices = @transform_5, window_bounds = array<i64: 256, 128>}, {pipeline_mode = #tpu.pipeline_mode<synchronous>, transform_indices = @transform_6, window_bounds = array<i64: 1, 128>}, {pipeline_mode = #tpu.pipeline_mode<synchronous>, transform_indices = @transform_7, window_bounds = array<i64: 128, 128>}, {pipeline_mode = #tpu.pipeline_mode<synchronous>, transform_indices = @transform_8, window_bounds = array<i64: 1, 128>}, {transform_indices = @transform_9, window_bounds = array<i64: 16, 128>}]} {
    %c0 = arith.constant 0 : index
    %c0_0 = arith.constant 0 : index
    %0 = vector.load %arg1[%c0, %c0_0] : memref<16x32xbf16, #tpu.memory_space<vmem>>, vector<16x32xbf16>
    %c0_1 = arith.constant 0 : index
    %c0_2 = arith.constant 0 : index
    %1 = vector.load %arg2[%c0_1, %c0_2] : memref<32x1024xbf16, #tpu.memory_space<vmem>>, vector<32x1024xbf16>
    %cst = arith.constant dense<0.000000e+00> : vector<16x1024xf32>
    %2 = tpu.matmul %0, %1, %cst {dimension_numbers = #tpu.dot_dimension_numbers<[1], [0], [0], [1], [0, 0, 1, 1], [], []>} : vector<16x32xbf16>, vector<32x1024xbf16>, vector<16x1024xf32> -> vector<16x1024xf32>
    %3 = arith.truncf %2 : vector<16x1024xf32> to vector<16x1024xbf16>
    %c0_3 = arith.constant 0 : index
    %c0_4 = arith.constant 0 : index
    %4 = vector.load %arg3[%c0_3, %c0_4] : memref<1x1024xf32, #tpu.memory_space<vmem>>, vector<1x1024xf32>
    %5 = arith.truncf %4 : vector<1x1024xf32> to vector<1x1024xbf16>
    %6 = vector.broadcast %5 : vector<1x1024xbf16> to vector<16x1024xbf16>
    %7 = arith.addf %3, %6 : vector<16x1024xbf16>
    %cst_5 = arith.constant 1.000980e-02 : bf16
    %8 = vector.broadcast %cst_5 : bf16 to vector<16x1024xbf16>
    %9 = arith.mulf %8, %7 : vector<16x1024xbf16>
    %10 = arith.maximumf %7, %9 : vector<16x1024xbf16>
    %c0_6 = arith.constant 0 : index
    %c0_7 = arith.constant 0 : index
    %11 = vector.load %arg4[%c0_6, %c0_7] : memref<1024x256xbf16, #tpu.memory_space<vmem>>, vector<1024x256xbf16>
    %cst_8 = arith.constant dense<0.000000e+00> : vector<16x256xf32>
    %12 = tpu.matmul %10, %11, %cst_8 {dimension_numbers = #tpu.dot_dimension_numbers<[1], [0], [0], [1], [0, 0, 1, 1], [], []>} : vector<16x1024xbf16>, vector<1024x256xbf16>, vector<16x256xf32> -> vector<16x256xf32>
    %13 = arith.truncf %12 : vector<16x256xf32> to vector<16x256xbf16>
    %c0_9 = arith.constant 0 : index
    %c0_10 = arith.constant 0 : index
    %14 = vector.load %arg5[%c0_9, %c0_10] : memref<1x256xf32, #tpu.memory_space<vmem>>, vector<1x256xf32>
    %15 = arith.truncf %14 : vector<1x256xf32> to vector<1x256xbf16>
    %16 = vector.broadcast %15 : vector<1x256xbf16> to vector<16x256xbf16>
    %17 = arith.addf %13, %16 : vector<16x256xbf16>
    %cst_11 = arith.constant 1.000980e-02 : bf16
    %18 = vector.broadcast %cst_11 : bf16 to vector<16x256xbf16>
    %19 = arith.mulf %18, %17 : vector<16x256xbf16>
    %20 = arith.maximumf %17, %19 : vector<16x256xbf16>
    %c0_12 = arith.constant 0 : index
    %c0_13 = arith.constant 0 : index
    %21 = vector.load %arg6[%c0_12, %c0_13] : memref<256x128xbf16, #tpu.memory_space<vmem>>, vector<256x128xbf16>
    %cst_14 = arith.constant dense<0.000000e+00> : vector<16x128xf32>
    %22 = tpu.matmul %20, %21, %cst_14 {dimension_numbers = #tpu.dot_dimension_numbers<[1], [0], [0], [1], [0, 0, 1, 1], [], []>} : vector<16x256xbf16>, vector<256x128xbf16>, vector<16x128xf32> -> vector<16x128xf32>
    %23 = arith.truncf %22 : vector<16x128xf32> to vector<16x128xbf16>
    %c0_15 = arith.constant 0 : index
    %c0_16 = arith.constant 0 : index
    %24 = vector.load %arg7[%c0_15, %c0_16] : memref<1x128xf32, #tpu.memory_space<vmem>>, vector<1x128xf32>
    %25 = arith.truncf %24 : vector<1x128xf32> to vector<1x128xbf16>
    %26 = vector.broadcast %25 : vector<1x128xbf16> to vector<16x128xbf16>
    %27 = arith.addf %23, %26 : vector<16x128xbf16>
    %cst_17 = arith.constant 1.000980e-02 : bf16
    %28 = vector.broadcast %cst_17 : bf16 to vector<16x128xbf16>
    %29 = arith.mulf %28, %27 : vector<16x128xbf16>
    %30 = arith.maximumf %27, %29 : vector<16x128xbf16>
    %c0_18 = arith.constant 0 : index
    %c0_19 = arith.constant 0 : index
    %31 = vector.load %arg8[%c0_18, %c0_19] : memref<128x128xbf16, #tpu.memory_space<vmem>>, vector<128x128xbf16>
    %cst_20 = arith.constant dense<0.000000e+00> : vector<16x128xf32>
    %32 = tpu.matmul %30, %31, %cst_20 {dimension_numbers = #tpu.dot_dimension_numbers<[1], [0], [0], [1], [0, 0, 1, 1], [], []>} : vector<16x128xbf16>, vector<128x128xbf16>, vector<16x128xf32> -> vector<16x128xf32>
    %c0_21 = arith.constant 0 : index
    %c0_22 = arith.constant 0 : index
    %33 = vector.load %arg9[%c0_21, %c0_22] : memref<1x128xf32, #tpu.memory_space<vmem>>, vector<1x128xf32>
    %34 = vector.broadcast %33 : vector<1x128xf32> to vector<16x128xf32>
    %35 = arith.addf %32, %34 : vector<16x128xf32>
    %cst_23 = arith.constant 5.000000e-01 : f32
    %36 = vector.broadcast %cst_23 : f32 to vector<16x128xf32>
    %37 = arith.mulf %36, %35 : vector<16x128xf32>
    %38 = math.tanh %37 : vector<16x128xf32>
    %cst_24 = arith.constant 1.000000e+00 : f32
    %39 = vector.broadcast %cst_24 : f32 to vector<16x128xf32>
    %40 = arith.addf %38, %39 : vector<16x128xf32>
    %cst_25 = arith.constant 5.000000e-01 : f32
    %41 = vector.broadcast %cst_25 : f32 to vector<16x128xf32>
    %42 = arith.mulf %41, %40 : vector<16x128xf32>
    %c0_26 = arith.constant 0 : index
    %c0_27 = arith.constant 0 : index
    %43 = vector.load %arg10[%c0_26, %c0_27] : memref<16x128xf32, #tpu.memory_space<vmem>>, vector<16x128xf32>
    tpu.vector_store %arg10[%c0_26, %c0_27], %42 {strides = array<i32>} : memref<16x128xf32, #tpu.memory_space<vmem>>, vector<16x128xf32>,
    return
  }
  func.func @transform_0(%arg0: i32) -> (i32, i32) {
    %c0_i32 = arith.constant 0 : i32
    %c0_i32_0 = arith.constant 0 : i32
    return %arg0, %c0_i32 : i32, i32
  }
  func.func @transform_1(%arg0: i32) -> (i32, i32) {
    %c0_i32 = arith.constant 0 : i32
    %c0_i32_0 = arith.constant 0 : i32
    %c0_i32_1 = arith.constant 0 : i32
    return %c0_i32, %c0_i32_0 : i32, i32
  }
  func.func @transform_2(%arg0: i32) -> (i32, i32) {
    %c0_i32 = arith.constant 0 : i32
    %c0_i32_0 = arith.constant 0 : i32
    %c0_i32_1 = arith.constant 0 : i32
    return %c0_i32, %c0_i32_0 : i32, i32
  }
  func.func @transform_3(%arg0: i32) -> (i32, i32) {
    %c0_i32 = arith.constant 0 : i32
    %c0_i32_0 = arith.constant 0 : i32
    %c0_i32_1 = arith.constant 0 : i32
    return %c0_i32, %c0_i32_0 : i32, i32
  }
  func.func @transform_4(%arg0: i32) -> (i32, i32) {
    %c0_i32 = arith.constant 0 : i32
    %c0_i32_0 = arith.constant 0 : i32
    %c0_i32_1 = arith.constant 0 : i32
    return %c0_i32, %c0_i32_0 : i32, i32
  }
  func.func @transform_5(%arg0: i32) -> (i32, i32) {
    %c0_i32 = arith.constant 0 : i32
    %c0_i32_0 = arith.constant 0 : i32
    %c0_i32_1 = arith.constant 0 : i32
    return %c0_i32, %c0_i32_0 : i32, i32
  }
  func.func @transform_6(%arg0: i32) -> (i32, i32) {
    %c0_i32 = arith.constant 0 : i32
    %c0_i32_0 = arith.constant 0 : i32
    %c0_i32_1 = arith.constant 0 : i32
    return %c0_i32, %c0_i32_0 : i32, i32
  }
  func.func @transform_7(%arg0: i32) -> (i32, i32) {
    %c0_i32 = arith.constant 0 : i32
    %c0_i32_0 = arith.constant 0 : i32
    %c0_i32_1 = arith.constant 0 : i32
    return %c0_i32, %c0_i32_0 : i32, i32
  }
  func.func @transform_8(%arg0: i32) -> (i32, i32) {
    %c0_i32 = arith.constant 0 : i32
    %c0_i32_0 = arith.constant 0 : i32
    %c0_i32_1 = arith.constant 0 : i32
    return %c0_i32, %c0_i32_0 : i32, i32
  }
  func.func @transform_9(%arg0: i32) -> (i32, i32) {
    %c0_i32 = arith.constant 0 : i32
    %c0_i32_0 = arith.constant 0 : i32
    return %arg0, %c0_i32 : i32, i32
  }
}

</mosaic_0001>

<bundles_post_ra>
// kernel: baseline_model_forward.1
= control target key start
LH: loop header
LB: loop body
LE: loop exit
PB: predicated region body
PF: predicated region fallthrough
CT: control target
= control target key end

     0   :  { %14 = vsyncpa [#allocation3], 0  ;;  %s2564_s0 = inlined_call_operand.vmem [shape: bf16[16,32], index: 0, kind: input, shape index: {}]   ;;  %s2565_s1 = inlined_call_operand.hbm [shape: bf16[32,1024], index: 1, kind: input, shape index: {}]   ;;  %s2566_s2 = inlined_call_operand.vmem [shape: f32[1,1024], index: 2, kind: input, shape index: {}]   ;;  %s2567_s3 = inlined_call_operand.hbm [shape: bf16[1024,256], index: 3, kind: input, shape index: {}]   ;;  %s2568_s4 = inlined_call_operand.vmem [shape: f32[1,256], index: 4, kind: input, shape index: {}]   ;;  %s2569_s5 = inlined_call_operand.hbm [shape: bf16[256,128], index: 5, kind: input, shape index: {}]   ;;  %s2570_s6 = inlined_call_operand.vmem [shape: f32[1,128], index: 6, kind: input, shape index: {}]   ;;  %s2571_s7 = inlined_call_operand.hbm [shape: bf16[128,128], index: 7, kind: input, shape index: {}]   ;;  %s2572_s8 = inlined_call_operand.vmem [shape: f32[1,128], index: 8, kind: input, shape index: {}]   ;;  %s2573_s9 = inlined_call_operand.vmem [shape: f32[16,128], index: 9, kind: output, shape index: {}]  }
   0x1   :  { %15 = vsyncpa [#allocation5], 0 }
   0x2   :  { %16 = vsyncpa [#allocation8], 0  ;;  %s2358_s30 = smov [#allocation4]   ;;  %s2264_s13 = scalar_lea.hbm %s2567_s3, 16384 }
   0x3   :  { %s38_s10 = sshll.u32 %s2358_s30, 4  ;;  %p2265_p0 = scmp.ne.s32.totalorder %s2567_s3, %s2264_s13  ;;  %s39_s10 = int_to_ptr.vmem [resolvable:$true] %s38_s10 }
   0x4   :  { %p2268_p1 = scmp.lt.u32.totalorder %s2264_s13, %s2567_s3 }
   0x6   :  { %p2270_p2 = pnand %p2268_p1, %p2265_p0 }
   0x8   :  { %2273 = shalt.err (!%p2270_p2)
}
   0x9   :  { %s2274_s18 = scalar_lea.vmem %s39_s10, 16384  ;;  %p2279_p4 = scmp.lt.s32.totalorder %s39_s10, %s39_s10 }
   0xa   :  { %p2275_p3 = scmp.ne.s32.totalorder %s39_s10, %s2274_s18  ;;  %p2280_p5 = scmp.lt.s32.totalorder %s2274_s18, %s2274_s18 }
   0xc   :  { %p2281_p6 = por %p2280_p5, %p2279_p4 }
   0xe   :  { %p2282_p7 = pnand %p2281_p6, %p2275_p3 }
  0x10   :  { %2285 = shalt.err (!%p2282_p7)
}
  0x11   :  { %s2359_s19 = smov 128   ;;  %s2360_s20 = smov 8  }
  0x12   :  { %44 = dma.hbm_to_vmem [thread:$0]  %s2567_s3, 16384, %s39_s10, [#allocation5], %s2359_s19, %s2359_s19, %s2360_s20  }
  0x13   :  { %s2361_s23 = smov [#allocation2]   ;;  %s2286_s27 = scalar_lea.hbm %s2565_s1, 2048 }
  0x14   :  { %s24_s24 = sshll.u32 %s2361_s23, 4  ;;  %p2287_p8 = scmp.ne.s32.totalorder %s2565_s1, %s2286_s27  ;;  %s25_s24 = int_to_ptr.vmem [resolvable:$true] %s24_s24 }
  0x15   :  { %p2290_p9 = scmp.lt.u32.totalorder %s2286_s27, %s2565_s1 }
  0x17   :  { %p2292_p10 = pnand %p2290_p9, %p2287_p8 }
  0x19   :  { %2295 = shalt.err (!%p2292_p10)
}
  0x1a   :  { %s2296_s12 = scalar_lea.vmem %s25_s24, 2048  ;;  %p2301_p12 = scmp.lt.s32.totalorder %s25_s24, %s25_s24 }
  0x1b   :  { %p2297_p11 = scmp.ne.s32.totalorder %s25_s24, %s2296_s12  ;;  %p2302_p13 = scmp.lt.s32.totalorder %s2296_s12, %s2296_s12 }
  0x1d   :  { %p2303_p0 = por %p2302_p13, %p2301_p12 }
  0x1f   :  { %p2304_p1 = pnand %p2303_p0, %p2297_p11 }
  0x21   :  { %2307 = shalt.err (!%p2304_p1)
}
  0x22   :  { %s2362_s3 = smov 512   ;;  %s2363_s10 = smov 32  }
  0x23   :  { %30 = dma.hbm_to_vmem [thread:$0]  %s2565_s1, 2048, %s25_s24, [#allocation3], %s2362_s3, %s2362_s3, %s2363_s10  }
  0x24   :  { %s2364_s15 = smov [#allocation6]   ;;  %s2308_s19 = scalar_lea.hbm %s2569_s5, 2048 }
  0x25   :  { %s52_s16 = sshll.u32 %s2364_s15, 4  ;;  %p2309_p2 = scmp.ne.s32.totalorder %s2569_s5, %s2308_s19  ;;  %s53_s16 = int_to_ptr.vmem [resolvable:$true] %s52_s16 }
  0x26   :  { %p2312_p3 = scmp.lt.u32.totalorder %s2308_s19, %s2569_s5 }
  0x28   :  { %p2314_p4 = pnand %p2312_p3, %p2309_p2 }
  0x2a   :  { %2317 = shalt.err (!%p2314_p4)
}
  0x2b   :  { %s2318_s25 = scalar_lea.vmem %s53_s16, 2048  ;;  %p2323_p6 = scmp.lt.s32.totalorder %s53_s16, %s53_s16 }
  0x2c   :  { %p2319_p5 = scmp.ne.s32.totalorder %s53_s16, %s2318_s25  ;;  %p2324_p7 = scmp.lt.s32.totalorder %s2318_s25, %s2318_s25 }
  0x2e   :  { %p2325_p8 = por %p2324_p7, %p2323_p6 }
  0x30   :  { %p2326_p9 = pnand %p2325_p8, %p2319_p5 }
  0x32   :  { %2329 = shalt.err (!%p2326_p9)
}
  0x33   :  { %s2365_s1 = smov 64   ;;  %s2366_s24 = smov 4  }
  0x34   :  { %58 = dma.hbm_to_vmem [thread:$0]  %s2569_s5, 2048, %s53_s16, [#allocation5], %s2365_s1, %s2365_s1, %s2366_s24  }
  0x35   :  { %s2367_s28 = smov [#allocation7]   ;;  %s2330_s12 = scalar_lea.hbm %s2571_s7, 1024 }
  0x36   :  { %s66_s29 = sshll.u32 %s2367_s28, 4  ;;  %p2331_p10 = scmp.ne.s32.totalorder %s2571_s7, %s2330_s12  ;;  %s67_s29 = int_to_ptr.vmem [resolvable:$true] %s66_s29 }
  0x37   :  { %p2334_p11 = scmp.lt.u32.totalorder %s2330_s12, %s2571_s7 }
  0x39   :  { %p2336_p12 = pnand %p2334_p11, %p2331_p10 }
  0x3b   :  { %2339 = shalt.err (!%p2336_p12)
}
  0x3c   :  { %s2340_s15 = scalar_lea.vmem %s67_s29, 1024  ;;  %p2345_p0 = scmp.lt.s32.totalorder %s67_s29, %s67_s29 }
  0x3d   :  { %p2341_p13 = scmp.ne.s32.totalorder %s67_s29, %s2340_s15  ;;  %p2346_p1 = scmp.lt.s32.totalorder %s2340_s15, %s2340_s15 }
  0x3f   :  { %p2347_p2 = por %p2346_p1, %p2345_p0 }
  0x41   :  { %p2348_p3 = pnand %p2347_p2, %p2341_p13 }
  0x43   :  { %2351 = shalt.err (!%p2348_p3)
}
  0x44   :  { %72 = dma.hbm_to_vmem [thread:$0]  %s2571_s7, 1024, %s67_s29, [#allocation8], %s2365_s1, %s2365_s1, %s2366_s24  }
  0x45   :  { %2352 = dma.done.wait [#allocation3], 2048  }
  0x46   :  { %2353 = vsyncadd [#allocation3], 4294965248 }
  0x47   :  { %2354 = dma.done.wait [#allocation5], 18432  }
  0x48   :  { %2355 = vsyncadd [#allocation5], 4294948864 }
  0x49   :  { %2356 = dma.done.wait [#allocation8], 1024  }
  0x4a   :  { %2357 = vsyncadd [#allocation8], 4294966272  ;;  %v2368_v0 = vmov 0   ;;  %v91_v1 = vld [vmem:[#allocation2] sm:$0xff]  ;;  %v92_v8 = vld [vmem:[#allocation2 + $0x8] sm:$0xff]  ;;  %vm192_vm0 = vcmask 261120  }
  0x4b   :  { %228 = vmatprep.mubr.bf16.mxu1 %v2368_v0  ;;  %v95_v2 = vld [vmem:[#allocation2 + $0x20] sm:$0xff]  ;;  %v96_v9 = vld [vmem:[#allocation2 + $0x28] sm:$0xff]  ;;  %v93_v16 = vld [vmem:[#allocation2 + $0x10] sm:$0xff]  ;;  %vm2370_vm1 = vmmov 0  }
  0x4c   :  { %v99_v3 = vld [vmem:[#allocation2 + $0x40] sm:$0xff]  ;;  %v1795_v4 = vcombine.high %v91_v1, %v95_v2  ;;  %v1794_v5 = vcombine.low %v91_v1, %v95_v2  ;;  %v1797_v11 = vcombine.high %v92_v8, %v96_v9  ;;  %v100_v12 = vld [vmem:[#allocation2 + $0x48] sm:$0xff]  ;;  %v1796_v15 = vcombine.low %v92_v8, %v96_v9  ;;  %v97_v19 = vld [vmem:[#allocation2 + $0x30] sm:$0xff] }
  0x4d   :  { %v103_v6 = vld [vmem:[#allocation2 + $0x60] sm:$0xff]  ;;  %v104_v13 = vld [vmem:[#allocation2 + $0x68] sm:$0xff]  ;;  %v2056_v22 = vld [vmem:[#allocation4 + $0x114] ss:$8 sps:$4 sm:$0xff]   ;;  %v1799_v23 = vcombine.high %v93_v16, %v97_v19  ;;  %v1798_v28 = vcombine.low %v93_v16, %v97_v19 }
  0x4e   :  { %v1803_v7 = vcombine.high %v99_v3, %v103_v6  ;;  %196 = vmatprep.subr.bf16.mxu1 %v1795_v4  ;;  %v1802_v10 = vcombine.low %v99_v3, %v103_v6  ;;  %v2473_v14 = vld [vmem:[%s2564_s0] sm:$0xff]   ;;  %v1805_v17 = vcombine.high %v100_v12, %v104_v13  ;;  %v1804_v21 = vcombine.low %v100_v12, %v104_v13  ;;  %v101_v24 = vld [vmem:[#allocation2 + $0x50] sm:$0xff]  ;;  %v94_v29 = vld [vmem:[#allocation2 + $0x18] sm:$0xff] }
  0x4f   :  { %197 = vmatpush1.bf16.msra.mxu1 %v1794_v5  ;;  %v2050_v18 = vld [vmem:[#allocation4 + $0x104] ss:$8 sps:$4 sm:$0xff]   ;;  %v2055_v20 = vld [vmem:[#allocation4 + $0x100] ss:$8 sps:$4 sm:$0xff]   ;;  %v105_v25 = vld [vmem:[#allocation2 + $0x70] sm:$0xff] }
  0x50   :  { %198 = vmatprep.subr.bf16.mxu1 %v1803_v7  ;;  %1317 = vmatprep.subr.bf16.mxu0 %v2050_v18  ;;  %v2061_v26 = vld [vmem:[#allocation4 + $0x110] ss:$8 sps:$4 sm:$0xff]   ;;  %v2062_v27 = vld [vmem:[#allocation4 + $0x124] ss:$8 sps:$4 sm:$0xff]   ;;  %v1807_v31 = vcombine.high %v101_v24, %v105_v25  ;;  %v2067_v32 = vld [vmem:[#allocation4 + $0x120] ss:$8 sps:$4 sm:$0xff]   ;;  %v1806_v34 = vcombine.low %v101_v24, %v105_v25 }
  0x51   :  { %1318 = vmatpush1.bf16.msra.mxu0 %v2055_v20  ;;  %v98_v30 = vld [vmem:[#allocation2 + $0x38] sm:$0xff]  ;;  %v2074_v39 = vld [vmem:[#allocation4 + $0x144] ss:$8 sps:$4 sm:$0xff]   ;;  %v2079_v42 = vld [vmem:[#allocation4 + $0x140] ss:$8 sps:$4 sm:$0xff]  }
  0x52   :  { %1319 = vmatprep.subr.bf16.mxu0 %v2056_v22  ;;  %v2068_v33 = vld [vmem:[#allocation4 + $0x134] ss:$8 sps:$4 sm:$0xff]   ;;  %v1801_v36 = vcombine.high %v94_v29, %v98_v30  ;;  %v2073_v38 = vld [vmem:[#allocation4 + $0x130] ss:$8 sps:$4 sm:$0xff]   ;;  %v1800_v40 = vcombine.low %v94_v29, %v98_v30  ;;  %v2046_v45 = vld [vmem:[#allocation4 + $0x4] ss:$8 sps:$4 sm:$0xff]  }
  0x53   :  { %199 = vmatpush1.bf16.msra.mxu1 %v1802_v10  ;;  %v102_v35 = vld [vmem:[#allocation2 + $0x58] sm:$0xff]  ;;  %v2086_v47 = vld [vmem:[#allocation4 + $0x164] ss:$8 sps:$4 sm:$0xff]   ;;  %v2044_v48 = vld [vmem:[#allocation4] ss:$8 sps:$4 sm:$0xff]  }
  0x54   :  { %239 = vmatprep.subr.bf16.mxu1 %v1797_v11  ;;  %v106_v37 = vld [vmem:[#allocation2 + $0x78] sm:$0xff]  ;;  %v2091_v50 = vld [vmem:[#allocation4 + $0x160] ss:$8 sps:$4 sm:$0xff]   ;;  %v2054_v53 = vld [vmem:[#allocation4 + $0x24] ss:$8 sps:$4 sm:$0xff]  }
  0x55   :  { %1320 = vmatpush1.bf16.msra.mxu0 %v2061_v26  ;;  %v1809_v41 = vcombine.high %v102_v35, %v106_v37  ;;  %v2080_v43 = vld [vmem:[#allocation4 + $0x154] ss:$8 sps:$4 sm:$0xff]   ;;  %v1808_v44 = vcombine.low %v102_v35, %v106_v37  ;;  %v2085_v46 = vld [vmem:[#allocation4 + $0x150] ss:$8 sps:$4 sm:$0xff]   ;;  %v2052_v55 = vld [vmem:[#allocation4 + $0x20] ss:$8 sps:$4 sm:$0xff]   ;;  %v378_v35 = vlaneseq }
  0x56   :  { %1810 = vmatmul.mubr.msk.bf16.vlgmr.msra.gmra.mrb[0].mxu1 %vm192_vm0, %v2473_v14  ;;  %1321 = vmatprep.subr.bf16.mxu0 %v2062_v27  ;;  %v2049_v49 = vld [vmem:[#allocation4 + $0x14] ss:$8 sps:$4 sm:$0xff]   ;;  %v2047_v52 = vld [vmem:[#allocation4 + $0x10] ss:$8 sps:$4 sm:$0xff]   ;;  %v2098_v56 = vld [vmem:[#allocation4 + $0x184] ss:$8 sps:$4 sm:$0xff]  }
  0x57   :  { %240 = vmatpush1.bf16.msra.mxu1 %v1796_v15  ;;  %271 = vmatprep.mubr.bf16.mxu1 %v2368_v0  ;;  %v2092_v51 = vld [vmem:[#allocation4 + $0x174] ss:$8 sps:$4 sm:$0xff]   ;;  %v2097_v54 = vld [vmem:[#allocation4 + $0x170] ss:$8 sps:$4 sm:$0xff]   ;;  %v2103_v58 = vld [vmem:[#allocation4 + $0x180] ss:$8 sps:$4 sm:$0xff]  }
  0x58   :  { %241 = vmatprep.subr.bf16.mxu1 %v1805_v17  ;;  %v2060_v57 = vld [vmem:[#allocation4 + $0x34] ss:$8 sps:$4 sm:$0xff]   ;;  %v2058_v60 = vld [vmem:[#allocation4 + $0x30] ss:$8 sps:$4 sm:$0xff]   ;;  %v2066_v61 = vld [vmem:[#allocation4 + $0x44] ss:$8 sps:$4 sm:$0xff]  }
  0x59   :  { %1322 = vmatpush1.bf16.msra.mxu0 %v2067_v32  ;;  %v2104_v59 = vld [vmem:[#allocation4 + $0x194] ss:$8 sps:$4 sm:$0xff]   ;;  %v2109_v62 = vld [vmem:[#allocation4 + $0x190] ss:$8 sps:$4 sm:$0xff]   ;;  %v2110_v63 = vld [vmem:[#allocation4 + $0x1a4] ss:$8 sps:$4 sm:$0xff]  }
  0x5a   :  { %1323 = vmatprep.subr.bf16.mxu0 %v2068_v33  ;;  %v2072_v1 = vld [vmem:[#allocation4 + $0x54] ss:$8 sps:$4 sm:$0xff]   ;;  %v2115_v2 = vld [vmem:[#allocation4 + $0x1a0] ss:$8 sps:$4 sm:$0xff]   ;;  %v2070_v3 = vld [vmem:[#allocation4 + $0x50] ss:$8 sps:$4 sm:$0xff]  }
  0x5b   :  { %242 = vmatpush1.bf16.msra.mxu1 %v1804_v21  ;;  %v2078_v4 = vld [vmem:[#allocation4 + $0x64] ss:$8 sps:$4 sm:$0xff]   ;;  %v2076_v5 = vld [vmem:[#allocation4 + $0x60] ss:$8 sps:$4 sm:$0xff]   ;;  %v2084_v6 = vld [vmem:[#allocation4 + $0x74] ss:$8 sps:$4 sm:$0xff]  }
  0x5c   :  { %282 = vmatprep.subr.bf16.mxu1 %v1799_v23  ;;  %v2082_v7 = vld [vmem:[#allocation4 + $0x70] ss:$8 sps:$4 sm:$0xff]   ;;  %v2090_v8 = vld [vmem:[#allocation4 + $0x84] ss:$8 sps:$4 sm:$0xff]   ;;  %v2088_v9 = vld [vmem:[#allocation4 + $0x80] ss:$8 sps:$4 sm:$0xff]  }
  0x5d   :  { %1324 = vmatpush1.bf16.msra.mxu0 %v2073_v38  ;;  %v2096_v10 = vld [vmem:[#allocation4 + $0x94] ss:$8 sps:$4 sm:$0xff]   ;;  %v2094_v11 = vld [vmem:[#allocation4 + $0x90] ss:$8 sps:$4 sm:$0xff]   ;;  %v2102_v12 = vld [vmem:[#allocation4 + $0xa4] ss:$8 sps:$4 sm:$0xff]  }
  0x5e   :  { %1811 = vmatmul.mubr.msk.bf16.vlgmr.msra.gmra.mrb[4].mxu1 %vm192_vm0, %v2473_v14  ;;  %1325 = vmatprep.subr.bf16.mxu0 %v2074_v39  ;;  %v2100_v13 = vld [vmem:[#allocation4 + $0xa0] ss:$8 sps:$4 sm:$0xff]   ;;  %v2106_v15 = vld [vmem:[#allocation4 + $0xb0] ss:$8 sps:$4 sm:$0xff]   ;;  %v2114_v16 = vld [vmem:[#allocation4 + $0xc4] ss:$8 sps:$4 sm:$0xff]  }
  0x5f   :  { %283 = vmatpush1.bf16.msra.mxu1 %v1798_v28  ;;  %314 = vmatprep.mubr.bf16.mxu1 %v2368_v0  ;;  %v2112_v17 = vld [vmem:[#allocation4 + $0xc0] ss:$8 sps:$4 sm:$0xff]   ;;  %v2116_v18 = vld [vmem:[#allocation4 + $0x1b4] ss:$8 sps:$4 sm:$0xff]   ;;  %v2121_v20 = vld [vmem:[#allocation4 + $0x1b0] ss:$8 sps:$4 sm:$0xff]  }
  0x60   :  { %284 = vmatprep.subr.bf16.mxu1 %v1807_v31  ;;  %v2120_v19 = vld [vmem:[#allocation4 + $0xd4] ss:$8 sps:$4 sm:$0xff]   ;;  %v2118_v21 = vld [vmem:[#allocation4 + $0xd0] ss:$8 sps:$4 sm:$0xff]   ;;  %v2122_v22 = vld [vmem:[#allocation4 + $0x1c4] ss:$8 sps:$4 sm:$0xff]  }
  0x61   :  { %1326 = vmatpush1.bf16.msra.mxu0 %v2079_v42  ;;  %v2126_v23 = vld [vmem:[#allocation4 + $0xe4] ss:$8 sps:$4 sm:$0xff]   ;;  %v2127_v24 = vld [vmem:[#allocation4 + $0x1c0] ss:$8 sps:$4 sm:$0xff]   ;;  %v2128_v26 = vld [vmem:[#allocation4 + $0x1d4] ss:$8 sps:$4 sm:$0xff]  }
  0x62   :  { %1327 = vmatprep.subr.bf16.mxu0 %v2080_v43  ;;  %v2124_v25 = vld [vmem:[#allocation4 + $0xe0] ss:$8 sps:$4 sm:$0xff]   ;;  %v2132_v27 = vld [vmem:[#allocation4 + $0xf4] ss:$8 sps:$4 sm:$0xff]   ;;  %v2133_v28 = vld [vmem:[#allocation4 + $0x1d0] ss:$8 sps:$4 sm:$0xff]  }
  0x63   :  { %285 = vmatpush1.bf16.msra.mxu1 %v1806_v34  ;;  %v2130_v29 = vld [vmem:[#allocation4 + $0xf0] ss:$8 sps:$4 sm:$0xff]   ;;  %v2134_v30 = vld [vmem:[#allocation4 + $0x1e4] ss:$8 sps:$4 sm:$0xff]   ;;  %v2136_v31 = vld [vmem:[#allocation4 + $0x1e0] ss:$8 sps:$4 sm:$0xff]  }
  0x64   :  { %325 = vmatprep.subr.bf16.mxu1 %v1801_v36  ;;  %v2137_v32 = vld [vmem:[#allocation4 + $0x1f4] ss:$8 sps:$4 sm:$0xff]   ;;  %v2139_v33 = vld [vmem:[#allocation4 + $0x1f0] ss:$8 sps:$4 sm:$0xff]   ;;  %v2142_v34 = vld [vmem:[#allocation4 + $0x204] ss:$8 sps:$4 sm:$0xff]  }
  0x65   :  { %1328 = vmatpush1.bf16.msra.mxu0 %v2085_v46  ;;  %v2486_v36 = vshrl.u32 %v378_v35, 7  ;;  %v2494_v38 = vld [vmem:[%s2566_s2] sm:$0xff] }
  0x66   :  { %1812 = vmatmul.mubr.msk.bf16.vlgmr.msra.gmra.mrb[8].mxu1 %vm192_vm0, %v2473_v14  ;;  %1329 = vmatprep.subr.bf16.mxu0 %v2086_v47 }
  0x67   :  { %326 = vmatpush1.bf16.msra.mxu1 %v1800_v40  ;;  %357 = vmatprep.mubr.bf16.mxu1 %v2368_v0  ;;  %v2064_v0 = vld [vmem:[#allocation4 + $0x40] ss:$8 sps:$4 sm:$0xff]   ;;  %v2489_v37 = vsub.s32 0, %v2486_v36  ;;  %v384_v39 = vsub.s32 1, %v2486_v36  ;;  %v388_v43 = vsub.s32 2, %v2486_v36 }
  0x68   :  { %327 = vmatprep.subr.bf16.mxu1 %v1809_v41 }
  0x69   :  { %1330 = vmatpush1.bf16.msra.mxu0 %v2091_v50  ;;  %v381_v40 = vrot.slane %v2494_v38, %v2489_v37  ;;  %v385_v41 = vrot.slane %v2494_v38, %v384_v39  ;;  %v389_v47 = vrot.slane %v2494_v38, %v388_v43 }
  0x6a   :  { %1331 = vmatprep.subr.bf16.mxu0 %v2092_v51 }
  0x6b   :  { %328 = vmatpush1.bf16.msra.mxu1 %v1808_v44  ;;  %v418_v42 = vpack.c.bf16 %v381_v40, %v381_v40  ;;  %v419_v44 = vpack.c.bf16 %v385_v41, %v385_v41  ;;  %v2146_v41 = vld [vmem:[#allocation4 + $0x220] ss:$8 sps:$4 sm:$0xff]  }
  0x6c   :  { %1274 = vmatprep.subr.bf16.mxu1 %v2046_v45  ;;  %v392_v45 = vsub.s32 3, %v2486_v36 }
  0x6d   :  { %1332 = vmatpush1.bf16.msra.mxu0 %v2097_v54  ;;  %v427_v46 = vpack.i.b16 %v418_v42, %v418_v42 }
  0x6e   :  { %1813 = vmatmul.mubr.msk.bf16.vlgmr.msra.gmra.mrb[12].mxu1 %vm192_vm0, %v2473_v14  ;;  %1333 = vmatprep.subr.bf16.mxu0 %v2098_v56  ;;  %v2108_v14 = vld [vmem:[#allocation4 + $0xb4] ss:$8 sps:$4 sm:$0xff]  }
  0x6f   :  { %1275 = vmatpush1.bf16.msra.mxu1 %v2044_v48  ;;  %v434_v48 = vpack.i.b16 %v419_v44, %v419_v44  ;;  %v2151_v44 = vld [vmem:[#allocation4 + $0x234] ss:$8 sps:$4 sm:$0xff]  }
  0x70   :  { %1276 = vmatprep.subr.bf16.mxu1 %v2049_v49  ;;  %v393_v49 = vrot.slane %v2494_v38, %v392_v45 }
  0x71   :  { %1334 = vmatpush1.bf16.msra.mxu0 %v2103_v58 }
  0x72   :  { %1335 = vmatprep.subr.bf16.mxu0 %v2104_v59  ;;  %v421_v56 = vpack.c.bf16 %v393_v49, %v393_v49  ;;  %v2154_v49 = vld [vmem:[#allocation4 + $0x244] ss:$8 sps:$4 sm:$0xff]  }
  0x73   :  { %1277 = vmatpush1.bf16.msra.mxu1 %v2047_v52  ;;  %v432_v52 = vrot.slane %v427_v46, %v2489_v37 }
  0x74   :  { %1278 = vmatprep.subr.bf16.mxu1 %v2054_v53  ;;  %v420_v53 = vpack.c.bf16 %v389_v47, %v389_v47 }
  0x75   :  { %1336 = vmatpush1.bf16.msra.mxu0 %v2109_v62 }
  0x76   :  { %1337 = vmatprep.subr.bf16.mxu0 %v2110_v63  ;;  %v441_v62 = vpack.i.b16 %v420_v53, %v420_v53  ;;  %v2160_v53 = vld [vmem:[#allocation4 + $0x264] ss:$8 sps:$4 sm:$0xff]  }
  0x77   :  { %1279 = vmatpush1.bf16.msra.mxu1 %v2052_v55  ;;  %v439_v55 = vrot.slane %v434_v48, %v2489_v37  ;;  %v2149_v48 = vld [vmem:[#allocation4 + $0x230] ss:$8 sps:$4 sm:$0xff]  }
  0x78   :  { %1280 = vmatprep.subr.bf16.mxu1 %v2060_v57  ;;  %v400_v57 = vsub.s32 5, %v2486_v36 }
  0x79   :  { %1338 = vmatpush1.bf16.msra.mxu0 %v2115_v2 }
  0x7a   :  { %1339 = vmatprep.subr.bf16.mxu0 %v2116_v18 }
  0x7b   :  { %1281 = vmatpush1.bf16.msra.mxu1 %v2058_v60 }
  0x7c   :  { %1282 = vmatprep.subr.bf16.mxu1 %v2066_v61 }
  0x7d   :  { %1340 = vmatpush1.bf16.msra.mxu0 %v2121_v20 }
  0x7e   :  { %1341 = vmatprep.subr.bf16.mxu0 %v2122_v22 }
  0x7f   :  { %1283 = vmatpush1.bf16.msra.mxu1 %v2064_v0  ;;  %v448_v0 = vpack.i.b16 %v421_v56, %v421_v56  ;;  %v2161_v56 = vld [vmem:[#allocation4 + $0x270] ss:$8 sps:$4 sm:$0xff]  }
  0x80   :  { %1284 = vmatprep.subr.bf16.mxu1 %v2072_v1  ;;  %v401_v1 = vrot.slane %v2494_v38, %v400_v57  ;;  %v2166_v57 = vld [vmem:[#allocation4 + $0x284] ss:$8 sps:$4 sm:$0xff]  }
  0x81   :  { %1342 = vmatpush1.bf16.msra.mxu0 %v2127_v24 }
  0x82   :  { %1343 = vmatprep.subr.bf16.mxu0 %v2128_v26 }
  0x83   :  { %1285 = vmatpush1.bf16.msra.mxu1 %v2070_v3 }
  0x84   :  { %1286 = vmatprep.subr.bf16.mxu1 %v2078_v4 }
  0x85   :  { %1344 = vmatpush1.bf16.msra.mxu0 %v2133_v28 }
  0x86   :  { %1345 = vmatprep.subr.bf16.mxu0 %v2134_v30 }
  0x87   :  { %1287 = vmatpush1.bf16.msra.mxu1 %v2076_v5 }
  0x88   :  { %1288 = vmatprep.subr.bf16.mxu1 %v2084_v6  ;;  %v446_v6 = vrot.slane %v441_v62, %v2489_v37  ;;  %v2172_v62 = vld [vmem:[#allocation4 + $0x2a4] ss:$8 sps:$4 sm:$0xff]  }
  0x89   :  { %1346 = vmatpush1.bf16.msra.mxu0 %v2136_v31  ;;  %v2143_v31 = vld [vmem:[#allocation4 + $0x210] ss:$8 sps:$4 sm:$0xff]  }
  0x8a   :  { %1347 = vmatprep.subr.bf16.mxu0 %v2137_v32 }
  0x8b   :  { %1289 = vmatpush1.bf16.msra.mxu1 %v2082_v7 }
  0x8c   :  { %1290 = vmatprep.subr.bf16.mxu1 %v2090_v8 }
  0x8d   :  { %1348 = vmatpush1.bf16.msra.mxu0 %v2139_v33  ;;  %v2148_v33 = vld [vmem:[#allocation4 + $0x224] ss:$8 sps:$4 sm:$0xff]  }
  0x8e   :  { %1360 = vmatprep.subr.bf16.mxu0 %v2142_v34 }
  0x8f   :  { %1291 = vmatpush1.bf16.msra.mxu1 %v2088_v9  ;;  %v453_v9 = vrot.slane %v448_v0, %v2489_v37  ;;  %v2170_v0 = vld [vmem:[#allocation4 + $0x2a0] ss:$8 sps:$4 sm:$0xff]  }
  0x90   :  { %1292 = vmatprep.subr.bf16.mxu1 %v2096_v10  ;;  %v423_v10 = vpack.c.bf16 %v401_v1, %v401_v1 }
  0x93   :  { %1293 = vmatpush1.bf16.msra.mxu1 %v2094_v11 }
  0x94   :  { %1294 = vmatprep.subr.bf16.mxu1 %v2102_v12 }
  0x97   :  { %1295 = vmatpush1.bf16.msra.mxu1 %v2100_v13 }
  0x98   :  { %1296 = vmatprep.subr.bf16.mxu1 %v2108_v14 }
  0x9b   :  { %1297 = vmatpush1.bf16.msra.mxu1 %v2106_v15 }
  0x9c   :  { %1298 = vmatprep.subr.bf16.mxu1 %v2114_v16 }
  0x9f   :  { %1299 = vmatpush1.bf16.msra.mxu1 %v2112_v17  ;;  %v462_v17 = vpack.i.b16 %v423_v10, %v423_v10 }
  0xa0   :  { %1300 = vmatprep.subr.bf16.mxu1 %v2120_v19 }
  0xa3   :  { %1301 = vmatpush1.bf16.msra.mxu1 %v2118_v21 }
  0xa4   :  { %1302 = vmatprep.subr.bf16.mxu1 %v2126_v23  ;;  %v2140_v23 = vld [vmem:[#allocation4 + $0x200] ss:$8 sps:$4 sm:$0xff]  }
  0xa7   :  { %1303 = vmatpush1.bf16.msra.mxu1 %v2124_v25  ;;  %v467_v25 = vrot.slane %v462_v17, %v2489_v37 }
  0xa8   :  { %1304 = vmatprep.subr.bf16.mxu1 %v2132_v27  ;;  %v2145_v27 = vld [vmem:[#allocation4 + $0x214] ss:$8 sps:$4 sm:$0xff]  }
  0xab   :  { %1305 = vmatpush1.bf16.msra.mxu1 %v2130_v29 }
 0x129   :  { %v230_v50 = vpop.f32.mrb[0].mxu1 }
 0x12a   :  { %v232_v51 = vpop.f32.mrb[1].mxu1 }
 0x12b   :  { %v234_v54 = vpop.f32.mrb[2].mxu1 }
 0x12c   :  { %v368_v58 = vpack.c.bf16 %v234_v54, %v230_v50  ;;  %v236_v59 = vpop.f32.mrb[3].mxu1  ;;  %v2152_v50 = vld [vmem:[#allocation4 + $0x240] ss:$8 sps:$4 sm:$0xff]  }
 0x12d   :  { %v369_v60 = vpack.c.bf16 %v236_v59, %v232_v51  ;;  %v2157_v51 = vld [vmem:[#allocation4 + $0x254] ss:$8 sps:$4 sm:$0xff]   ;;  %v2158_v54 = vld [vmem:[#allocation4 + $0x260] ss:$8 sps:$4 sm:$0xff]  }
 0x12e   :  { %v482_v61 = vadd.bf16 %v432_v52, %v368_v58  ;;  %v2155_v52 = vld [vmem:[#allocation4 + $0x250] ss:$8 sps:$4 sm:$0xff]   ;;  %v2164_v58 = vld [vmem:[#allocation4 + $0x280] ss:$8 sps:$4 sm:$0xff]   ;;  %v2169_v59 = vld [vmem:[#allocation4 + $0x294] ss:$8 sps:$4 sm:$0xff]  }
 0x12f   :  { %v483_v63 = vadd.bf16 %v439_v55, %v369_v60  ;;  %v2163_v55 = vld [vmem:[#allocation4 + $0x274] ss:$8 sps:$4 sm:$0xff]   ;;  %v2167_v60 = vld [vmem:[#allocation4 + $0x290] ss:$8 sps:$4 sm:$0xff]  }
 0x130   :  { %v490_v2 = vmul.bf16 1009007652, %v482_v61 }
 0x131   :  { %v491_v3 = vmul.bf16 1009007652, %v483_v63  ;;  %v273_v4 = vpop.f32.mrb[4].mxu1 }
 0x132   :  { %v275_v5 = vpop.f32.mrb[5].mxu1  ;;  %v498_v11 = vmax.bf16 %v490_v2, %v482_v61  ;;  %v408_v61 = vsub.s32 7, %v2486_v36  ;;  %v2175_v2 = vld [vmem:[#allocation4 + $0x2b4] ss:$8 sps:$4 sm:$0xff]  }
 0x133   :  { %v277_v7 = vpop.f32.mrb[6].mxu1  ;;  %v499_v8 = vmax.bf16 %v491_v3, %v483_v63  ;;  %v396_v63 = vsub.s32 4, %v2486_v36 }
 0x134   :  { %v370_v12 = vpack.c.bf16 %v277_v7, %v273_v4  ;;  %v279_v13 = vpop.f32.mrb[7].mxu1  ;;  %v409_v1 = vrot.slane %v2494_v38, %v408_v61  ;;  %v2173_v4 = vld [vmem:[#allocation4 + $0x2b0] ss:$8 sps:$4 sm:$0xff]   ;;  %v2220_v61 = vld [vmem:[#allocation4 + $0x3a4] ss:$8 sps:$4 sm:$0xff]  }
 0x135   :  { %v371_v14 = vpack.c.bf16 %v279_v13, %v275_v5  ;;  %1306 = vmatprep.mubr.bf16.mxu1 %v499_v8  ;;  %v397_v3 = vrot.slane %v2494_v38, %v396_v63  ;;  %v2176_v8 = vld [vmem:[#allocation4 + $0x2c0] ss:$8 sps:$4 sm:$0xff]  }
 0x136   :  { %v484_v15 = vadd.bf16 %v446_v6, %v370_v12  ;;  %1307 = vmatmul.mubr.bf16.vlgmr.msra.gmra.mrb[16].mxu1 %v498_v11  ;;  %v425_v5 = vpack.c.bf16 %v409_v1, %v409_v1  ;;  %v2178_v6 = vld [vmem:[#allocation4 + $0x2c4] ss:$8 sps:$4 sm:$0xff]   ;;  %v2181_v11 = vld [vmem:[#allocation4 + $0x2d4] ss:$8 sps:$4 sm:$0xff]   ;;  %v2179_v12 = vld [vmem:[#allocation4 + $0x2d0] ss:$8 sps:$4 sm:$0xff]  }
 0x137   :  { %v485_v16 = vadd.bf16 %v453_v9, %v371_v14  ;;  %v422_v7 = vpack.c.bf16 %v397_v3, %v397_v3  ;;  %v2218_v63 = vld [vmem:[#allocation4 + $0x3a0] ss:$8 sps:$4 sm:$0xff]   ;;  %v2226_v3 = vld [vmem:[#allocation4 + $0x3c4] ss:$8 sps:$4 sm:$0xff]  }
 0x138   :  { %v492_v18 = vmul.bf16 1009007652, %v484_v15  ;;  %v476_v9 = vpack.i.b16 %v425_v5, %v425_v5  ;;  %v2224_v5 = vld [vmem:[#allocation4 + $0x3c0] ss:$8 sps:$4 sm:$0xff]  }
 0x139   :  { %v493_v19 = vmul.bf16 1009007652, %v485_v16  ;;  %v2512_v20 = vpop.f32.mrb[8].mxu1  ;;  %v455_v10 = vpack.i.b16 %v422_v7, %v422_v7  ;;  %v2229_v7 = vld [vmem:[#allocation4 + $0x3d4] ss:$8 sps:$4 sm:$0xff]  }
 0x13a   :  { %v318_v21 = vpop.f32.mrb[9].mxu1  ;;  %v500_v26 = vmax.bf16 %v492_v18, %v484_v15  ;;  %v481_v13 = vrot.slane %v476_v9, %v2489_v37  ;;  %v2184_v15 = vld [vmem:[#allocation4 + $0x2e4] ss:$8 sps:$4 sm:$0xff]  }
 0x13b   :  { %v501_v22 = vmax.bf16 %v493_v19, %v485_v16  ;;  %v2514_v24 = vpop.f32.mrb[10].mxu1  ;;  %v460_v14 = vrot.slane %v455_v10, %v2489_v37  ;;  %v2182_v16 = vld [vmem:[#allocation4 + $0x2e0] ss:$8 sps:$4 sm:$0xff]   ;;  %v2187_v19 = vld [vmem:[#allocation4 + $0x2f4] ss:$8 sps:$4 sm:$0xff]  }
 0x13c   :  { %v372_v28 = vpack.c.bf16 %v2514_v24, %v2512_v20  ;;  %v322_v29 = vpop.f32.mrb[11].mxu1  ;;  %v2196_v20 = vld [vmem:[#allocation4 + $0x324] ss:$8 sps:$4 sm:$0xff]   ;;  %v2194_v24 = vld [vmem:[#allocation4 + $0x320] ss:$8 sps:$4 sm:$0xff]  }
 0x13d   :  { %1349 = vmatprep.mubr.bf16.mxu0 %v501_v22  ;;  %v373_v30 = vpack.c.bf16 %v322_v29, %v318_v21  ;;  %v2185_v21 = vld [vmem:[#allocation4 + $0x2f0] ss:$8 sps:$4 sm:$0xff]   ;;  %v2232_v10 = vld [vmem:[#allocation4 + $0x3e4] ss:$8 sps:$4 sm:$0xff]  }
 0x13e   :  { %1350 = vmatmul.mubr.bf16.vlgmr.msra.gmra.mrb[0].mxu0 %v500_v26  ;;  %v486_v18 = vadd.bf16 %v460_v14, %v372_v28  ;;  %v2188_v26 = vld [vmem:[#allocation4 + $0x300] ss:$8 sps:$4 sm:$0xff]   ;;  %v2199_v28 = vld [vmem:[#allocation4 + $0x334] ss:$8 sps:$4 sm:$0xff]  }
 0x13f   :  { %1361 = vmatpush1.bf16.msra.mxu0 %v2140_v23  ;;  %v487_v32 = vadd.bf16 %v467_v25, %v373_v30  ;;  %v2190_v25 = vld [vmem:[#allocation4 + $0x304] ss:$8 sps:$4 sm:$0xff]   ;;  %v2193_v30 = vld [vmem:[#allocation4 + $0x314] ss:$8 sps:$4 sm:$0xff]  }
 0x140   :  { %1362 = vmatprep.subr.bf16.mxu0 %v2145_v27  ;;  %v494_v23 = vmul.bf16 1009007652, %v486_v18 }
 0x141   :  { %v495_v34 = vmul.bf16 1009007652, %v487_v32  ;;  %v2519_v35 = vpop.f32.mrb[12].mxu1 }
 0x142   :  { %v2521_v40 = vpop.f32.mrb[13].mxu1  ;;  %v502_v29 = vmax.bf16 %v494_v23, %v486_v18  ;;  %v2247_v23 = vld [vmem:[#allocation6 + $0x28] sm:$0xff]  }
 0x143   :  { %1363 = vmatpush1.bf16.msra.mxu0 %v2143_v31  ;;  %v503_v42 = vmax.bf16 %v495_v34, %v487_v32  ;;  %v2523_v43 = vpop.f32.mrb[14].mxu1  ;;  %v2191_v31 = vld [vmem:[#allocation4 + $0x310] ss:$8 sps:$4 sm:$0xff]   ;;  %v2200_v34 = vld [vmem:[#allocation4 + $0x340] ss:$8 sps:$4 sm:$0xff]  }
 0x144   :  { %1364 = vmatprep.subr.bf16.mxu0 %v2148_v33  ;;  %v374_v45 = vpack.c.bf16 %v2523_v43, %v2519_v35  ;;  %v365_v46 = vpop.f32.mrb[15].mxu1  ;;  %v2197_v32 = vld [vmem:[#allocation4 + $0x330] ss:$8 sps:$4 sm:$0xff]   ;;  %v2202_v33 = vld [vmem:[#allocation4 + $0x344] ss:$8 sps:$4 sm:$0xff]  }
 0x145   :  { %1392 = vmatprep.mubr.bf16.mxu0 %v503_v42  ;;  %v375_v47 = vpack.c.bf16 %v365_v46, %v2521_v40  ;;  %v2205_v40 = vld [vmem:[#allocation4 + $0x354] ss:$8 sps:$4 sm:$0xff]   ;;  %v2237_v42 = vld [vmem:[#allocation6] sm:$0xff]   ;;  %v2203_v46 = vld [vmem:[#allocation4 + $0x350] ss:$8 sps:$4 sm:$0xff]  }
 0x146   :  { %v2248_v35 = vld [vmem:[#allocation6 + $0x70] sm:$0xff]  }
 0x147   :  { %1365 = vmatpush1.bf16.msra.mxu0 %v2146_v41  ;;  %v489_v17 = vadd.bf16 %v481_v13, %v375_v47  ;;  %v2236_v41 = vld [vmem:[#allocation6 + $0x40] sm:$0xff]   ;;  %v2239_v47 = vld [vmem:[#allocation6 + $0x8] sm:$0xff]   ;;  %v2233_v13 = vld [vmem:[#allocation4 + $0x3f0] ss:$8 sps:$4 sm:$0xff]  }
 0x148   :  { %1366 = vmatprep.subr.bf16.mxu0 %v2151_v44  ;;  %v2238_v44 = vld [vmem:[#allocation6 + $0x48] sm:$0xff]   ;;  %1967 = vmatprep.subr.bf16.mxu1 %v2236_v41  ;;  %v2249_v43 = vld [vmem:[#allocation6 + $0x30] sm:$0xff]  }
 0x149   :  { %v497_v22 = vmul.bf16 1009007652, %v489_v17  ;;  %1968 = vmatpush3.bf16.msra.mxu1 %v2237_v42 }
 0x14a   :  { %1969 = vmatprep.subr.bf16.mxu1 %v2238_v44 }
 0x14b   :  { %1367 = vmatpush1.bf16.msra.mxu0 %v2149_v48  ;;  %v505_v27 = vmax.bf16 %v497_v22, %v489_v17  ;;  %v2208_v48 = vld [vmem:[#allocation4 + $0x364] ss:$8 sps:$4 sm:$0xff]  }
 0x14c   :  { %1368 = vmatprep.subr.bf16.mxu0 %v2154_v49  ;;  %v2240_v49 = vld [vmem:[#allocation6 + $0x50] sm:$0xff]   ;;  %v2246_v22 = vld [vmem:[#allocation6 + $0x68] sm:$0xff]  }
 0x14d   :  { %1970 = vmatpush3.bf16.msra.mxu1 %v2239_v47 }
 0x14e   :  { %1971 = vmatprep.subr.bf16.mxu1 %v2240_v49 }
 0x14f   :  { %1369 = vmatpush1.bf16.msra.mxu0 %v2152_v50  ;;  %v2206_v50 = vld [vmem:[#allocation4 + $0x360] ss:$8 sps:$4 sm:$0xff]  }
 0x150   :  { %1370 = vmatprep.subr.bf16.mxu0 %v2157_v51  ;;  %v2241_v51 = vld [vmem:[#allocation6 + $0x10] sm:$0xff]  }
 0x151   :  { %1972 = vmatpush3.bf16.msra.mxu1 %v2241_v51 }
 0x153   :  { %1371 = vmatpush1.bf16.msra.mxu0 %v2155_v52  ;;  %v2211_v52 = vld [vmem:[#allocation4 + $0x374] ss:$8 sps:$4 sm:$0xff]  }
 0x154   :  { %1372 = vmatprep.subr.bf16.mxu0 %v2160_v53  ;;  %v2242_v53 = vld [vmem:[#allocation6 + $0x58] sm:$0xff]  }
 0x155   :  { %1973 = vmatprep.subr.bf16.mxu1 %v2242_v53 }
 0x157   :  { %1373 = vmatpush1.bf16.msra.mxu0 %v2158_v54  ;;  %v2209_v54 = vld [vmem:[#allocation4 + $0x370] ss:$8 sps:$4 sm:$0xff]  }
 0x158   :  { %1374 = vmatprep.subr.bf16.mxu0 %v2163_v55  ;;  %v2243_v55 = vld [vmem:[#allocation6 + $0x18] sm:$0xff]  }
 0x159   :  { %1974 = vmatpush3.bf16.msra.mxu1 %v2243_v55 }
 0x15b   :  { %1375 = vmatpush1.bf16.msra.mxu0 %v2161_v56  ;;  %v2214_v56 = vld [vmem:[#allocation4 + $0x384] ss:$8 sps:$4 sm:$0xff]  }
 0x15c   :  { %1376 = vmatprep.subr.bf16.mxu0 %v2166_v57  ;;  %v2244_v57 = vld [vmem:[#allocation6 + $0x60] sm:$0xff]  }
 0x15d   :  { %1975 = vmatprep.subr.bf16.mxu1 %v2244_v57  ;;  %v2254_v57 = vld [vmem:[#allocation7 + $0x10] sm:$0xff]  }
 0x15f   :  { %1377 = vmatpush1.bf16.msra.mxu0 %v2164_v58  ;;  %v2212_v58 = vld [vmem:[#allocation4 + $0x380] ss:$8 sps:$4 sm:$0xff]  }
 0x160   :  { %1378 = vmatprep.subr.bf16.mxu0 %v2169_v59  ;;  %v2217_v59 = vld [vmem:[#allocation4 + $0x394] ss:$8 sps:$4 sm:$0xff]  }
 0x163   :  { %1379 = vmatpush1.bf16.msra.mxu0 %v2167_v60  ;;  %v2215_v60 = vld [vmem:[#allocation4 + $0x390] ss:$8 sps:$4 sm:$0xff]  }
 0x164   :  { %1380 = vmatprep.subr.bf16.mxu0 %v2172_v62  ;;  %v404_v62 = vsub.s32 6, %v2486_v36 }
 0x166   :  { %v405_v1 = vrot.slane %v2494_v38, %v404_v62  ;;  %v2259_v62 = vld [vmem:[#allocation7 + $0x38] sm:$0xff]  }
 0x167   :  { %1381 = vmatpush1.bf16.msra.mxu0 %v2170_v0  ;;  %v2223_v0 = vld [vmem:[#allocation4 + $0x3b4] ss:$8 sps:$4 sm:$0xff]  }
 0x168   :  { %1382 = vmatprep.subr.bf16.mxu0 %v2175_v2  ;;  %v2221_v2 = vld [vmem:[#allocation4 + $0x3b0] ss:$8 sps:$4 sm:$0xff]  }
 0x16b   :  { %1383 = vmatpush1.bf16.msra.mxu0 %v2173_v4  ;;  %v424_v4 = vpack.c.bf16 %v405_v1, %v405_v1 }
 0x16c   :  { %1384 = vmatprep.subr.bf16.mxu0 %v2178_v6 }
 0x16d   :  { %v469_v6 = vpack.i.b16 %v424_v4, %v424_v4 }
 0x16f   :  { %1385 = vmatpush1.bf16.msra.mxu0 %v2176_v8  ;;  %v2227_v8 = vld [vmem:[#allocation4 + $0x3d0] ss:$8 sps:$4 sm:$0xff]   ;;  %v474_v9 = vrot.slane %v469_v6, %v2489_v37 }
 0x170   :  { %1386 = vmatprep.subr.bf16.mxu0 %v2181_v11  ;;  %v2230_v11 = vld [vmem:[#allocation4 + $0x3e0] ss:$8 sps:$4 sm:$0xff]  }
 0x171   :  { %v488_v38 = vadd.bf16 %v474_v9, %v374_v45  ;;  %v2250_v45 = vld [vmem:[#allocation6 + $0x78] sm:$0xff]  }
 0x173   :  { %1387 = vmatpush1.bf16.msra.mxu0 %v2179_v12  ;;  %v2235_v12 = vld [vmem:[#allocation4 + $0x3f4] ss:$8 sps:$4 sm:$0xff]   ;;  %v496_v14 = vmul.bf16 1009007652, %v488_v38 }
 0x174   :  { %1388 = vmatprep.subr.bf16.mxu0 %v2184_v15 }
 0x175   :  { %v504_v15 = vmax.bf16 %v496_v14, %v488_v38 }
 0x177   :  { %1389 = vmatpush1.bf16.msra.mxu0 %v2182_v16 }
 0x178   :  { %1390 = vmatprep.subr.bf16.mxu0 %v2187_v19 }
 0x17b   :  { %1391 = vmatpush1.bf16.msra.mxu0 %v2185_v21  ;;  %v2245_v21 = vld [vmem:[#allocation6 + $0x20] sm:$0xff]  }
 0x17c   :  { %1403 = vmatprep.subr.bf16.mxu0 %v2190_v25  ;;  %1976 = vmatpush3.bf16.msra.mxu1 %v2245_v21  ;;  %v2251_v25 = vld [vmem:[#allocation6 + $0x38] sm:$0xff]  }
 0x17d   :  { %1977 = vmatprep.subr.bf16.mxu1 %v2246_v22 }
 0x17e   :  { %1393 = vmatmul.mubr.bf16.vlgmr.msra.gmra.mrb[0].mxu0 %v502_v29 }
 0x17f   :  { %1404 = vmatpush1.bf16.msra.mxu0 %v2188_v26  ;;  %1435 = vmatprep.mubr.bf16.mxu0 %v505_v27  ;;  %v2369_v26 = vmov 0.0   ;;  %v1448_v27 = vld [vmem:[%s2568_s4] sm:$0x3] }
 0x180   :  { %1405 = vmatprep.subr.bf16.mxu0 %v2193_v30  ;;  %1978 = vmatpush3.bf16.msra.mxu1 %v2247_v23  ;;  %v1453_v29 = vrot.slane %v1448_v27, %v2489_v37  ;;  %v1457_v30 = vrot.slane %v1448_v27, %v384_v39 }
 0x181   :  { %1979 = vmatprep.subr.bf16.mxu1 %v2248_v35 }
 0x183   :  { %1406 = vmatpush1.bf16.msra.mxu0 %v2191_v31  ;;  %v1460_v31 = vpack.c.bf16 %v1453_v29, %v1453_v29 }
 0x184   :  { %1407 = vmatprep.subr.bf16.mxu0 %v2196_v20  ;;  %1980 = vmatpush3.bf16.msra.mxu1 %v2249_v43  ;;  %v1461_v20 = vpack.c.bf16 %v1457_v30, %v1457_v30 }
 0x185   :  { %1981 = vmatprep.subr.bf16.mxu1 %v2250_v45 }
 0x187   :  { %1408 = vmatpush1.bf16.msra.mxu0 %v2194_v24  ;;  %v1463_v24 = vpack.i.b16 %v1460_v31, %v1460_v31 }
 0x188   :  { %1409 = vmatprep.subr.bf16.mxu0 %v2199_v28  ;;  %1982 = vmatpush3.bf16.msra.mxu1 %v2251_v25 }
 0x189   :  { %1998 = vmatprep.subr.bf16.mxu1 %v2369_v26  ;;  %v1468_v44 = vrot.slane %v1463_v24, %v2489_v37 }
 0x18b   :  { %1410 = vmatpush1.bf16.msra.mxu0 %v2197_v32  ;;  %v1470_v32 = vpack.i.b16 %v1461_v20, %v1461_v20 }
 0x18c   :  { %1411 = vmatprep.subr.bf16.mxu0 %v2202_v33 }
 0x18f   :  { %1412 = vmatpush1.bf16.msra.mxu0 %v2200_v34 }
 0x190   :  { %1413 = vmatprep.subr.bf16.mxu0 %v2205_v40 }
 0x193   :  { %1414 = vmatpush1.bf16.msra.mxu0 %v2203_v46 }
 0x194   :  { %1415 = vmatprep.subr.bf16.mxu0 %v2208_v48  ;;  %v1475_v48 = vrot.slane %v1470_v32, %v2489_v37 }
 0x197   :  { %1416 = vmatpush1.bf16.msra.mxu0 %v2206_v50 }
 0x198   :  { %1417 = vmatprep.subr.bf16.mxu0 %v2211_v52 }
 0x19b   :  { %1418 = vmatpush1.bf16.msra.mxu0 %v2209_v54  ;;  %v2252_v54 = vld [vmem:[#allocation7] sm:$0xff]  }
 0x19c   :  { %1419 = vmatprep.subr.bf16.mxu0 %v2214_v56  ;;  %v2253_v56 = vld [vmem:[#allocation7 + $0x8] sm:$0xff]  }
 0x19f   :  { %1420 = vmatpush1.bf16.msra.mxu0 %v2212_v58  ;;  %v2255_v58 = vld [vmem:[#allocation7 + $0x18] sm:$0xff]  }
 0x1a0   :  { %1421 = vmatprep.subr.bf16.mxu0 %v2217_v59  ;;  %v2256_v59 = vld [vmem:[#allocation7 + $0x20] sm:$0xff]  }
 0x1a3   :  { %1422 = vmatpush1.bf16.msra.mxu0 %v2215_v60  ;;  %v2257_v60 = vld [vmem:[#allocation7 + $0x28] sm:$0xff]  }
 0x1a4   :  { %1423 = vmatprep.subr.bf16.mxu0 %v2220_v61  ;;  %v2258_v61 = vld [vmem:[#allocation7 + $0x30] sm:$0xff]  }
 0x1a7   :  { %1424 = vmatpush1.bf16.msra.mxu0 %v2218_v63  ;;  %v1652_v63 = vld [vmem:[%s2570_s6] sm:$0x1] }
 0x1a8   :  { %1425 = vmatprep.subr.bf16.mxu0 %v2223_v0  ;;  %v1653_v0 = vpack.c.bf16 %v1652_v63, %v1652_v63 }
 0x1ab   :  { %1426 = vmatpush1.bf16.msra.mxu0 %v2221_v2  ;;  %v1655_v2 = vpack.i.b16 %v1653_v0, %v1653_v0 }
 0x1ac   :  { %1427 = vmatprep.subr.bf16.mxu0 %v2226_v3 }
 0x1af   :  { %1428 = vmatpush1.bf16.msra.mxu0 %v2224_v5 }
 0x1b0   :  { %1429 = vmatprep.subr.bf16.mxu0 %v2229_v7 }
 0x1b3   :  { %1430 = vmatpush1.bf16.msra.mxu0 %v2227_v8  ;;  %v1660_v8 = vrot.slane %v1655_v2, %v2489_v37 }
 0x1b4   :  { %1431 = vmatprep.subr.bf16.mxu0 %v2232_v10 }
 0x1b7   :  { %1432 = vmatpush1.bf16.msra.mxu0 %v2230_v11 }
 0x1b8   :  { %1433 = vmatprep.subr.bf16.mxu0 %v2235_v12  ;;  %v1958_v12 = vld [vmem:[%s2572_s8] ss:$0 sm:$0xff] }
 0x1bb   :  { %1434 = vmatpush1.bf16.msra.mxu0 %v2233_v13 }
 0x1be   :  { %1436 = vmatmul.mubr.bf16.vlgmr.msra.gmra.mrb[0].mxu0 %v504_v15 }
 0x209   :  { %v1308_v16 = vpop.f32.mrb[16].mxu1 }
 0x20a   :  { %v1310_v17 = vpop.f32.mrb[17].mxu1 }
 0x20b   :  { %v1312_v18 = vpop.f32.mrb[18].mxu1 }
 0x20c   :  { %v1314_v19 = vpop.f32.mrb[19].mxu1 }
 0x291   :  { %v1437_v28 = vpop.f32.mrb[0].mxu0 }
 0x292   :  { %v2018_v33 = vadd.f32 %v1437_v28, %v1308_v16  ;;  %v1439_v34 = vpop.f32.mrb[1].mxu0 }
 0x293   :  { %v2019_v40 = vadd.f32 %v1439_v34, %v1310_v17  ;;  %v1441_v41 = vpop.f32.mrb[2].mxu0 }
 0x294   :  { %v2020_v42 = vadd.f32 %v1441_v41, %v1312_v18  ;;  %v1443_v46 = vpop.f32.mrb[3].mxu0 }
 0x295   :  { %v2021_v47 = vadd.f32 %v1443_v46, %v1314_v19 }
 0x296   :  { %v1446_v49 = vpack.c.bf16 %v2020_v42, %v2018_v33 }
 0x297   :  { %v1447_v50 = vpack.c.bf16 %v2021_v47, %v2019_v40 }
 0x298   :  { %v1476_v36 = vadd.bf16 %v1468_v44, %v1446_v49 }
 0x299   :  { %v1477_v39 = vadd.bf16 %v1475_v48, %v1447_v50 }
 0x29a   :  { %v1478_v51 = vmul.bf16 1009007652, %v1476_v36 }
 0x29b   :  { %v1479_v52 = vmul.bf16 1009007652, %v1477_v39 }
 0x29c   :  { %v1480_v55 = vmax.bf16 %v1478_v51, %v1476_v36 }
 0x29d   :  { %v1481_v53 = vmax.bf16 %v1479_v52, %v1477_v39 }
 0x29f   :  { %1642 = vmatprep.mubr.bf16.mxu1 %v1481_v53 }
 0x2a0   :  { %1643 = vmatmul.mubr.bf16.vlgmr.msra.gmra.mrb[20].mxu1 %v1480_v55 }
 0x2a1   :  { %1999 = vmatpush3.bf16.msra.mxu1 %v2252_v54  ;;  %2014 = vmatprep.mubr.msk.bf16.mxu1 %vm2370_vm1, %v2369_v26 }
 0x2a2   :  { %2000 = vmatprep.subr.bf16.mxu1 %v2369_v26 }
 0x2a5   :  { %2001 = vmatpush3.bf16.msra.mxu1 %v2253_v56 }
 0x2a6   :  { %2002 = vmatprep.subr.bf16.mxu1 %v2369_v26 }
 0x2a9   :  { %2003 = vmatpush3.bf16.msra.mxu1 %v2254_v57 }
 0x2aa   :  { %2004 = vmatprep.subr.bf16.mxu1 %v2369_v26 }
 0x2ad   :  { %2005 = vmatpush3.bf16.msra.mxu1 %v2255_v58 }
 0x2ae   :  { %2006 = vmatprep.subr.bf16.mxu1 %v2369_v26 }
 0x2b1   :  { %2007 = vmatpush3.bf16.msra.mxu1 %v2256_v59 }
 0x2b2   :  { %2008 = vmatprep.subr.bf16.mxu1 %v2369_v26 }
 0x2b5   :  { %2009 = vmatpush3.bf16.msra.mxu1 %v2257_v60 }
 0x2b6   :  { %2010 = vmatprep.subr.bf16.mxu1 %v2369_v26 }
 0x2b9   :  { %2011 = vmatpush3.bf16.msra.mxu1 %v2258_v61 }
 0x2ba   :  { %2012 = vmatprep.subr.bf16.mxu1 %v2369_v26 }
 0x2bd   :  { %2013 = vmatpush3.bf16.msra.mxu1 %v2259_v62 }
 0x373   :  { %v1983_v1 = vpop.f32.mrb[20].mxu1 }
 0x374   :  { %v1984_v3 = vpop.f32.mrb[21].mxu1 }
 0x375   :  { %v1985_v4 = vadd.f32 %v1984_v3, %v1983_v1  ;;  %v1986_v5 = vpop.f32.mrb[22].mxu1 }
 0x376   :  { %v1987_v6 = vpop.f32.mrb[23].mxu1 }
 0x377   :  { %v1988_v7 = vadd.f32 %v1987_v6, %v1986_v5 }
 0x379   :  { %v1651_v9 = vpack.c.bf16 %v1988_v7, %v1985_v4 }
 0x37b   :  { %v1661_v10 = vadd.bf16 %v1660_v8, %v1651_v9 }
 0x37d   :  { %v1662_v11 = vmul.bf16 1009007652, %v1661_v10 }
 0x37f   :  { %v1663_v38 = vmax.bf16 %v1662_v11, %v1661_v10 }
 0x381   :  { %2015 = vmatmul.mubr.bf16.vlgmr.msra.gmra.mrb[24].mxu1 %v1663_v38 }
 0x454   :  { %v1769_v13 = vpop.f32.mrb[24].mxu1 }
 0x455   :  { %v1770_v14 = vadd.f32 %v1958_v12, %v1769_v13  ;;  %v2016_v15 = vpop.f32.mrb[25].mxu1 }
 0x456   :  { %v1772_v16 = vpop.f32.mrb[26].mxu1 }
 0x457   :  { %v1776_v17 = vmul.f32 0.5, %v1770_v14  ;;  %v1773_v18 = vadd.f32 %v1958_v12, %v1772_v16  ;;  %v2017_v19 = vpop.f32.mrb[27].mxu1 }
 0x459   :  { %2260 = vtanh.f32 %v1776_v17  ;;  %v1777_v21 = vmul.f32 0.5, %v1773_v18 }
 0x45b   :  { %2262 = vtanh.f32 %v1777_v21 }
 0x463   :  { %v2261_v37 = vpop.eup %2260 }
 0x464   :  { %v1780_v22 = vadd.f32 1.0, %v2261_v37 }
 0x465   :  { %v2263_v23 = vpop.eup %2262 }
 0x466   :  { %v1782_v35 = vmul.f32 0.5, %v1780_v22  ;;  %v1781_v43 = vadd.f32 1.0, %v2263_v23 }
 0x468   :  { %1784 = vst [vmem:[%s2573_s9] sm:$0xff] %v1782_v35  ;;  %v1783_v45 = vmul.f32 0.5, %v1781_v43 }
 0x46a   :  { %1785 = vst [vmem:[%s2573_s9 + $0x8] sm:$0xff] %v1783_v45 }
 0x46b   :  { %1790 = vsyncpa [#allocation3], 1 }
 0x46c   :  { %1791 = vsyncpa [#allocation5], 1 }
 0x46d   :  { %1792 = vsyncpa [#allocation8], 1 }

</bundles_post_ra>
